<compile_context>
chip_gen: v6e
topology: v6e:2x2x1
jax: 0.10.0
libtpu: 0.0.40
codegen_flags: <defaults>
</compile_context>

<pallas_src>
import functools

import jax
import jax.numpy as jnp
from jax.experimental import pallas as pl
from jax.experimental.pallas import tpu as pltpu


def _round_up(n, m):
    return ((n + m - 1) // m) * m


def _choose_f_tile(S, F128, itemsize):
    """Largest power-of-two multiple of 128 lanes that keeps the double-buffered
    VMEM footprint (x in + seasonal out + trend out) comfortably inside the
    smallest default scoped VMEM (v5e: 16 MiB), capped at 2048 lanes so the
    in-kernel working set (x used twice + seasonal) stays within the 64 vregs.
    """
    budget = 8 * 1024 * 1024          # bytes; leaves >2x headroom everywhere
    max_tile = 2048
    tile = 128
    while tile * 2 <= min(F128, max_tile):
        cand = tile * 2
        # double-buffered: 2 * (S*tile in + S*tile seasonal + tile trend)
        need = 2 * (2 * S * cand + cand) * itemsize
        if need > budget:
            break
        tile = cand
    return tile


def _evostd_kernel(x_ref, seas_ref, trend_ref, *, inv_s):
    """x_ref: (S, F_TILE) lane-dense block. trend = mean over S, seasonal = x - trend."""
    xf = x_ref[...].astype(jnp.float32)                     # f32 accumulation
    trend = jnp.sum(xf, axis=0, keepdims=True) * inv_s      # (1, F_TILE) f32
    seas_ref[...] = (xf - trend).astype(seas_ref.dtype)
    trend_ref[...] = trend.astype(trend_ref.dtype)


@jax.jit
def evostd(x):
    """EvoSTD forward.  x: (S, B, E) -> (seasonal (S, B, E), trend (1, B, E))."""
    S, B, E = x.shape
    F = B * E
    itemsize = jnp.dtype(x.dtype).itemsize

    F128 = _round_up(F, 128)
    tile = _choose_f_tile(S, F128, itemsize)
    F_pad = _round_up(F128, tile)

    x2 = x.reshape(S, F)
    if F_pad != F:
        # Pad lanes so every block/store is 128-lane dense (unmasked vst).
        x2 = jnp.pad(x2, ((0, 0), (0, F_pad - F)))

    grid = (F_pad // tile,)
    seas, trend = pl.pallas_call(
        functools.partial(_evostd_kernel, inv_s=1.0 / S),
        grid=grid,
        in_specs=[
            pl.BlockSpec((S, tile), lambda j: (0, j),
                         memory_space=pltpu.MemorySpace.VMEM),
        ],
        out_specs=(
            pl.BlockSpec((S, tile), lambda j: (0, j),
                         memory_space=pltpu.MemorySpace.VMEM),
            pl.BlockSpec((1, tile), lambda j: (0, j),
                         memory_space=pltpu.MemorySpace.VMEM),
        ),
        out_shape=(
            jax.ShapeDtypeStruct((S, F_pad), x.dtype),
            jax.ShapeDtypeStruct((1, F_pad), x.dtype),
        ),
        compiler_params=pltpu.CompilerParams(
            dimension_semantics=("parallel",),   # v7x: shard F tiles across 2 TCs
        ),
    )(x2)

    if F_pad != F:
        seas = seas[:, :F]
        trend = trend[:, :F]
    return seas.reshape(S, B, E), trend.reshape(1, B, E)


if __name__ == "__main__":
    # Small shapes consistent with the module: seq=8, batch=2, features=64
    # (B*E = 128 -> a single lane-dense tile / one grid step).
    S, B, E = 8, 2, 64
    key = jax.random.PRNGKey(0)
    x = jax.random.normal(key, (S, B, E), jnp.float32)

    seasonal, trend = evostd(x)
    seasonal = jax.block_until_ready(seasonal)
    trend = jax.block_until_ready(trend)

    assert seasonal.shape == (S, B, E), seasonal.shape
    assert trend.shape == (1, B, E), trend.shape

    # Reference check against the PyTorch semantics
    # (torch.mean(x, dim=0, keepdim=True); seasonal = x - trend).
    trend_ref = jnp.mean(x, axis=0, keepdims=True)
    seasonal_ref = x - trend_ref
    assert bool(jnp.allclose(trend, trend_ref, atol=1e-5, rtol=1e-5))
    assert bool(jnp.allclose(seasonal, seasonal_ref, atol=1e-5, rtol=1e-5))
    assert bool(jnp.all(jnp.isfinite(seasonal))) and bool(jnp.all(jnp.isfinite(trend)))

    # Sanity: a non-128-multiple lane count goes through the pad/slice path.
    S2, B2, E2 = 8, 3, 40   # F = 120 -> padded to 128 internally
    x2 = jax.random.normal(jax.random.PRNGKey(1), (S2, B2, E2), jnp.float32)
    s2, t2 = evostd(x2)
    s2 = jax.block_until_ready(s2)
    t2 = jax.block_until_ready(t2)
    t2_ref = jnp.mean(x2, axis=0, keepdims=True)
    assert bool(jnp.allclose(t2, t2_ref, atol=1e-5, rtol=1e-5))
    assert bool(jnp.allclose(s2, x2 - t2_ref, atol=1e-5, rtol=1e-5))

    print("KERNEL_OK")
</pallas_src>

<mosaic_0001>
module attributes {stable_mosaic.version = 11 : i64} {
  func.func @_evostd_kernel(%arg0: i32, %arg1: memref<8x128xf32, #tpu.memory_space<vmem>>, %arg2: memref<8x128xf32, #tpu.memory_space<vmem>>, %arg3: memref<1x128xf32, #tpu.memory_space<vmem>>) attributes {dimension_semantics = [#tpu.dimension_semantics<parallel>], iteration_bounds = array<i64: 1>, scalar_prefetch = 0 : i64, scratch_operands = 0 : i64, tpu.core_type = #tpu.core_type<tc>, window_params = [{transform_indices = @transform_0, window_bounds = array<i64: 8, 128>}, {transform_indices = @transform_1, window_bounds = array<i64: 8, 128>}, {transform_indices = @transform_2, window_bounds = array<i64: 1, 128>}]} {
    %c0 = arith.constant 0 : index
    %c0_0 = arith.constant 0 : index
    %0 = vector.load %arg1[%c0, %c0_0] : memref<8x128xf32, #tpu.memory_space<vmem>>, vector<8x128xf32>
    %cst = arith.constant dense<0.000000e+00> : vector<128xf32>
    %1 = vector.multi_reduction <add>, %0, %cst [0] : vector<8x128xf32> to vector<128xf32>
    %2 = vector.shape_cast %1 : vector<128xf32> to vector<1x128xf32>
    %cst_1 = arith.constant 1.250000e-01 : f32
    %3 = vector.broadcast %cst_1 : f32 to vector<1x128xf32>
    %4 = arith.mulf %2, %3 : vector<1x128xf32>
    %5 = vector.broadcast %4 : vector<1x128xf32> to vector<8x128xf32>
    %6 = arith.subf %0, %5 : vector<8x128xf32>
    %c0_2 = arith.constant 0 : index
    %c0_3 = arith.constant 0 : index
    %7 = vector.load %arg2[%c0_2, %c0_3] : memref<8x128xf32, #tpu.memory_space<vmem>>, vector<8x128xf32>
    tpu.vector_store %arg2[%c0_2, %c0_3], %6 {strides = array<i32>} : memref<8x128xf32, #tpu.memory_space<vmem>>, vector<8x128xf32>,
    %c0_4 = arith.constant 0 : index
    %c0_5 = arith.constant 0 : index
    %8 = vector.load %arg3[%c0_4, %c0_5] : memref<1x128xf32, #tpu.memory_space<vmem>>, vector<1x128xf32>
    tpu.vector_store %arg3[%c0_4, %c0_5], %4 {strides = array<i32>} : memref<1x128xf32, #tpu.memory_space<vmem>>, vector<1x128xf32>,
    return
  }
  func.func @transform_0(%arg0: i32) -> (i32, i32) {
    %c0_i32 = arith.constant 0 : i32
    %c0_i32_0 = arith.constant 0 : i32
    return %c0_i32, %arg0 : i32, i32
  }
  func.func @transform_1(%arg0: i32) -> (i32, i32) {
    %c0_i32 = arith.constant 0 : i32
    %c0_i32_0 = arith.constant 0 : i32
    return %c0_i32, %arg0 : i32, i32
  }
  func.func @transform_2(%arg0: i32) -> (i32, i32) {
    %c0_i32 = arith.constant 0 : i32
    %c0_i32_0 = arith.constant 0 : i32
    return %c0_i32, %arg0 : i32, i32
  }
}

</mosaic_0001>

<bundles_post_ra>
// kernel: evostd.1
= control target key start
LH: loop header
LB: loop body
LE: loop exit
PB: predicated region body
PF: predicated region fallthrough
CT: control target
= control target key end

     0   :  { %s53_s0 = inlined_call_operand.vmem [shape: f32[8,128], index: 0, kind: input, shape index: {}]   ;;  %s54_s2 = inlined_call_operand.vmem [shape: f32[1,128], index: 2, kind: output, shape index: {1}]   ;;  %s55_s1 = inlined_call_operand.vmem [shape: f32[8,128], index: 1, kind: output, shape index: {0}]  }
   0x1   :  { %v10_v0 = vld [vmem:[%s53_s0] sm:$0xff] }
   0x2   :  { %v11_v1 = vrot.slane %v10_v0, 4 }
   0x4   :  { %v12_v2 = vadd.f32 %v11_v1, %v10_v0 }
   0x6   :  { %v13_v3 = vrot.slane %v12_v2, 2 }
   0x8   :  { %v14_v4 = vadd.f32 %v13_v3, %v12_v2 }
   0xa   :  { %v15_v5 = vrot.slane %v14_v4, 1 }
   0xc   :  { %v16_v6 = vadd.f32 %v15_v5, %v14_v4 }
   0xe   :  { %v17_v7 = vmul.f32 0.125, %v16_v6 }
  0x10   :  { %v18_v8 = vsub.f32 %v10_v0, %v17_v7  ;;  %20 = vst [vmem:[%s54_s2] sm:$0x1] %v17_v7 }
  0x12   :  { %19 = vst [vmem:[%s55_s1] sm:$0xff] %v18_v8 }

</bundles_post_ra>
